<compile_context>
chip_gen: v7x
topology: tpu7x:2x2x1
jax: 0.10.0
libtpu: 0.0.40
codegen_flags: <defaults>
</compile_context>

<pallas_src>
import numpy as np
import jax
import jax.numpy as jnp
from jax import lax
from jax.experimental import pallas as pl
from jax.experimental.pallas import tpu as pltpu


# ----------------------------------------------------------------------------- kernels

def _dblock_kernel(x_ref, m1_ref, b1_ref, m2_ref, b2_ref, sd_ref, su_ref,
                   ph_ref, pw_ref, o_ref):
    """Non-initial D_Block, batch_tile images folded into the matmul M dimension:
       conv3x3(pad1) -> LReLU(0.2) -> conv3x3(pad1) -> LReLU(0.2) -> AvgPool2d(2,2).

       x_ref : (Bt*H, W*Cin)  bf16, batch-major rows, channel-minor columns.
       m1/m2 : (3, K, N)      bf16 banded weights (horizontal taps + zero pad baked in).
       sd/su : (Bt*H, Bt*H)   masked row-shift matrices (vertical halo, zero at edges).
       ph/pw : 0.5-weighted pooling matrices (rows / columns).
    """
    x = x_ref[...]
    sd = sd_ref[...]
    su = su_ref[...]

    # conv1: bf16 x bf16 banded matmuls with f32 accumulation; vertical taps via SD/SU.
    h0 = jnp.dot(x, m1_ref[0], preferred_element_type=jnp.float32)
    h1 = jnp.dot(x, m1_ref[1], preferred_element_type=jnp.float32)
    h2 = jnp.dot(x, m1_ref[2], preferred_element_type=jnp.float32)
    acc1 = (h1 + jnp.dot(sd, h0, preferred_element_type=jnp.float32)
               + jnp.dot(su, h2, preferred_element_type=jnp.float32))
    y1 = acc1 + b1_ref[...]
    y1 = jnp.where(y1 > 0, y1, 0.2 * y1)                    # LeakyReLU(0.2)

    # conv2: same structure; y1 stays in registers (no scratch round trip).
    yb = y1.astype(jnp.bfloat16)
    g0 = jnp.dot(yb, m2_ref[0], preferred_element_type=jnp.float32)
    g1 = jnp.dot(yb, m2_ref[1], preferred_element_type=jnp.float32)
    g2 = jnp.dot(yb, m2_ref[2], preferred_element_type=jnp.float32)
    acc2 = (g1 + jnp.dot(sd, g0, preferred_element_type=jnp.float32)
               + jnp.dot(su, g2, preferred_element_type=jnp.float32))
    y2 = acc2 + b2_ref[...]
    y2 = jnp.where(y2 > 0, y2, 0.2 * y2)

    # AvgPool2d(2,2) = PH @ y2 @ PW (larger column-pooling matmul first).
    o_ref[...] = jnp.dot(ph_ref[...],
                         jnp.dot(y2, pw_ref[...], preferred_element_type=jnp.float32),
                         preferred_element_type=jnp.float32)


def _dblock_initial_kernel(x_ref, m1_ref, b1_ref, smap_ref, m2_ref, b2_ref,
                           sd_ref, su_ref, asel_ref, esel_ref, wl_ref, bl_ref, o_ref):
    """Initial D_Block, whole batch fused in one call:
       Minibatch_std -> conv3x3(pad1) -> LReLU -> conv4x4(valid) -> LReLU
       -> Flatten -> Linear(out_ch, 1).

       The constant minibatch-std channel is folded in as  m * smap  where smap is the
       conv1 response of a unit constant channel (zero padding included).
    """
    K = x_ref.shape[1]                       # W*Cin
    H = asel_ref.shape[0]                    # image height (== 4)
    B = x_ref.shape[0] // H                  # batch size

    x = x_ref[...]                           # (B*H, W*Cin) bf16
    xf = x.astype(jnp.float32)

    # ---- Minibatch_std: unbiased std over the batch, averaged to one scalar m.
    asel = asel_ref[...]                     # (H, B*H) selection of row h of every image
    mu = jnp.dot(asel, xf, preferred_element_type=jnp.float32) * (1.0 / B)
    sq = jnp.dot(asel, xf * xf, preferred_element_type=jnp.float32)
    var = (sq - B * mu * mu) * (1.0 / (B - 1))
    var = jnp.maximum(var, 0.0)
    m = jnp.sum(jnp.sqrt(var)) * (1.0 / (H * K))

    # ---- conv1 (3x3, pad=1) on the real channels + m * smap for the std channel.
    sd = sd_ref[...]
    su = su_ref[...]
    h0 = jnp.dot(x, m1_ref[0], preferred_element_type=jnp.float32)
    h1 = jnp.dot(x, m1_ref[1], preferred_element_type=jnp.float32)
    h2 = jnp.dot(x, m1_ref[2], preferred_element_type=jnp.float32)
    acc1 = (h1 + jnp.dot(sd, h0, preferred_element_type=jnp.float32)
               + jnp.dot(su, h2, preferred_element_type=jnp.float32))
    y1 = acc1 + b1_ref[...] + m * smap_ref[...]
    y1 = jnp.where(y1 > 0, y1, 0.2 * y1)

    # ---- conv2 (4x4 VALID on the 4x4 map) -> one output row per batch element.
    yb = y1.astype(jnp.bfloat16)
    acc2 = jnp.zeros((B, m2_ref.shape[2]), jnp.float32)
    for kh in range(m2_ref.shape[0]):
        gk = jnp.dot(yb, m2_ref[kh], preferred_element_type=jnp.float32)   # (B*H, Cout)
        acc2 = acc2 + jnp.dot(esel_ref[kh], gk, preferred_element_type=jnp.float32)
    y2 = acc2 + b2_ref[...]
    y2 = jnp.where(y2 > 0, y2, 0.2 * y2)

    # ---- Flatten + Linear(out_ch, 1): lane reduction.
    o_ref[...] = jnp.sum(y2 * wl_ref[...], axis=1, keepdims=True) + bl_ref[...]


# ------------------------------------------------------------------ weight-matrix glue

def _build_banded_3x3(we, W):
    """Pad-free banded matrices: 3x3 'same' conv with horizontal taps + horizontal
       zero padding baked in.  Returns (3, W*Cin, W*Cout); vertical taps are applied
       by the SD/SU shift matrices inside the kernel."""
    Cout, Cin, KH, KW = we.shape
    m = np.zeros((KH, W * Cin, W * Cout), np.float32)
    for w in range(W):
        for kh in range(KH):
            for kw in range(KW):
                iw = w + kw - 1
                if 0 <= iw < W:
                    m[kh, iw * Cin:(iw + 1) * Cin,
                          w * Cout:(w + 1) * Cout] = we[:, :, kh, kw].T
    return m


def _build_flat_4x4_valid(we, W):
    """4x4 VALID conv on a WxW (W==KW) map: per-kernel-row weight slabs (KH, W*Cin, Cout)."""
    Cout, Cin, KH, KW = we.shape
    assert W == KW
    m = np.zeros((KH, W * Cin, Cout), np.float32)
    for kh in range(KH):
        for kw in range(KW):
            m[kh, kw * Cin:(kw + 1) * Cin, :] = we[:, :, kh, kw].T
    return m


def _build_shift_mats(Bt, H):
    """Masked row-shift matrices (down / up one image row, zero across image edges)."""
    M = Bt * H
    sd = np.zeros((M, M), np.float32)
    su = np.zeros((M, M), np.float32)
    for i in range(M):
        if i % H != 0:
            sd[i, i - 1] = 1.0
        if i % H != H - 1:
            su[i, i + 1] = 1.0
    return sd, su


def _build_pool_mats(Bt, H, W, C):
    """AvgPool2d(2,2) as  PH @ y @ PW  with 0.5-weighted entries (PH also de-interleaves
       the batch_tile row blocks)."""
    PH = np.zeros((Bt * (H // 2), Bt * H), np.float32)
    for b in range(Bt):
        for j in range(H // 2):
            PH[b * (H // 2) + j, b * H + 2 * j] = 0.5
            PH[b * (H // 2) + j, b * H + 2 * j + 1] = 0.5
    PW = np.zeros((W * C, (W // 2) * C), np.float32)
    eye = 0.5 * np.eye(C, dtype=np.float32)
    for j in range(W // 2):
        for r in range(2):
            PW[(2 * j + r) * C:(2 * j + r + 1) * C, j * C:(j + 1) * C] = eye
    return PH, PW


def _build_smap(we_extra, H, W):
    """Per-position conv1 response of a unit constant extra channel (zero padding)."""
    Cout = we_extra.shape[0]
    S = np.zeros((H, W, Cout), np.float32)
    for r in range(H):
        for w in range(W):
            for kh in range(3):
                for kw in range(3):
                    rr, ww = r + kh - 1, w + kw - 1
                    if 0 <= rr < H and 0 <= ww < W:
                        S[r, w, :] += we_extra[:, kh, kw]
    return S.reshape(H, W * Cout)


def make_dblock_params(key, in_ch, out_ch, H, W, B, initial_block=False, batch_tile=1):
    """Deterministic synthetic init matching D_Block.__init__.  Equalized-LR scaling is
       baked in offline; weights are quantized to bf16 (the reference uses the same
       dequantized weights so the check isolates kernel math)."""
    c_in = in_ch + 1 if initial_block else in_ch
    k2 = 4 if initial_block else 3
    k_w1, k_w2, k_lw, k_lb = jax.random.split(key, 4)

    w1 = np.asarray(jax.random.normal(k_w1, (out_ch, c_in, 3, 3), jnp.float32))
    b1 = np.zeros((out_ch,), np.float32)                 # nn.init.zeros_
    w2 = np.asarray(jax.random.normal(k_w2, (out_ch, out_ch, k2, k2), jnp.float32))
    b2 = np.zeros((out_ch,), np.float32)
    s1 = float(np.sqrt(2.0 / (c_in * 3 * 3)))            # EqualizedLR: sqrt(2 / fan_in)
    s2 = float(np.sqrt(2.0 / (out_ch * k2 * k2)))
    we1 = np.asarray(jnp.asarray(w1 * s1).astype(jnp.bfloat16).astype(jnp.float32))
    we2 = np.asarray(jnp.asarray(w2 * s2).astype(jnp.bfloat16).astype(jnp.float32))

    ref = dict(we1=jnp.asarray(we1), b1=jnp.asarray(b1),
               we2=jnp.asarray(we2), b2=jnp.asarray(b2))
    mats = dict(Cout=out_ch)

    if initial_block:
        assert H == 4 and W == 4, "initial D_Block expects a 4x4 map"
        we1_main, we1_extra = we1[:, :in_ch], we1[:, in_ch]
        m1 = _build_banded_3x3(we1_main, W)
        m2 = _build_flat_4x4_valid(we2, W)
        sd, su = _build_shift_mats(B, H)
        asel = np.zeros((H, B * H), np.float32)          # row-h-of-every-image selector
        for h in range(H):
            for b in range(B):
                asel[h, b * H + h] = 1.0
        esel = np.zeros((k2, B, B * H), np.float32)      # image-row-kh-of-image-b selector
        for kh in range(k2):
            for b in range(B):
                esel[kh, b, b * H + kh] = 1.0
        wlin = (np.asarray(jax.random.normal(k_lw, (1, out_ch), jnp.float32))
                / np.sqrt(out_ch)).astype(np.float32)
        blin = (np.asarray(jax.random.normal(k_lb, (1,), jnp.float32)) * 0.1).astype(np.float32)
        mats.update(
            m1=jnp.asarray(m1, jnp.bfloat16),
            b1row=jnp.asarray(np.tile(b1, W).reshape(1, W * out_ch)),
            smap=jnp.asarray(np.tile(_build_smap(we1_extra, H, W), (B, 1))),
            m2=jnp.asarray(m2, jnp.bfloat16),
            b2row=jnp.asarray(b2.reshape(1, out_ch)),
            sd=jnp.asarray(sd), su=jnp.asarray(su),
            asel=jnp.asarray(asel), esel=jnp.asarray(esel),
            wlin_row=jnp.asarray(wlin), blin=jnp.asarray(blin.reshape(1, 1)))
        ref["wlin"], ref["blin"] = jnp.asarray(wlin), jnp.asarray(blin)
    else:
        m1 = _build_banded_3x3(we1, W)
        m2 = _build_banded_3x3(we2, W)
        sd, su = _build_shift_mats(batch_tile, H)
        PH, PW = _build_pool_mats(batch_tile, H, W, out_ch)
        mats.update(
            m1=jnp.asarray(m1, jnp.bfloat16),
            b1row=jnp.asarray(np.tile(b1, W).reshape(1, W * out_ch)),
            m2=jnp.asarray(m2, jnp.bfloat16),
            b2row=jnp.asarray(np.tile(b2, W).reshape(1, W * out_ch)),
            sd=jnp.asarray(sd), su=jnp.asarray(su),
            PH=jnp.asarray(PH), PW=jnp.asarray(PW),
            batch_tile=batch_tile)
    return mats, ref


# ------------------------------------------------------------------------- wrappers

def d_block_pallas(x_nchw, mats):
    """initial_block=False path: returns NCHW (B, out_ch, H//2, W//2)."""
    B, Cin, H, W = x_nchw.shape
    Cout = int(mats["Cout"])
    Bt = int(mats["batch_tile"])
    assert B % Bt == 0
    Mt = Bt * H

    # NCHW -> batch-major rows, channel-minor columns; bf16 activations (f32 accumulate).
    x2d = jnp.transpose(x_nchw, (0, 2, 3, 1)).reshape(B * H, W * Cin).astype(jnp.bfloat16)

    out = pl.pallas_call(
        _dblock_kernel,
        out_shape=jax.ShapeDtypeStruct((B * (H // 2), (W // 2) * Cout), jnp.float32),
        grid=(B // Bt,),
        in_specs=[
            pl.BlockSpec((Mt, W * Cin), lambda i: (i, 0)),
            pl.BlockSpec((3, W * Cin, W * Cout), lambda i: (0, 0, 0)),
            pl.BlockSpec((1, W * Cout), lambda i: (0, 0)),
            pl.BlockSpec((3, W * Cout, W * Cout), lambda i: (0, 0, 0)),
            pl.BlockSpec((1, W * Cout), lambda i: (0, 0)),
            pl.BlockSpec((Mt, Mt), lambda i: (0, 0)),
            pl.BlockSpec((Mt, Mt), lambda i: (0, 0)),
            pl.BlockSpec((Bt * (H // 2), Mt), lambda i: (0, 0)),
            pl.BlockSpec((W * Cout, (W // 2) * Cout), lambda i: (0, 0)),
        ],
        out_specs=pl.BlockSpec((Bt * (H // 2), (W // 2) * Cout), lambda i: (i, 0)),
        compiler_params=pltpu.CompilerParams(dimension_semantics=("parallel",)),
    )(x2d, mats["m1"], mats["b1row"], mats["m2"], mats["b2row"],
      mats["sd"], mats["su"], mats["PH"], mats["PW"])

    return out.reshape(B, H // 2, W // 2, Cout).transpose(0, 3, 1, 2)   # -> NCHW


def d_block_initial_pallas(x_nchw, mats):
    """initial_block=True path (fully fused, incl. Minibatch_std): returns (B, 1)."""
    B, Cin, H, W = x_nchw.shape
    x2d = jnp.transpose(x_nchw, (0, 2, 3, 1)).reshape(B * H, W * Cin).astype(jnp.bfloat16)

    vmem = pl.BlockSpec(memory_space=pltpu.MemorySpace.VMEM)
    out = pl.pallas_call(
        _dblock_initial_kernel,
        out_shape=jax.ShapeDtypeStruct((B, 1), jnp.float32),
        in_specs=[vmem] * 12,
        out_specs=vmem,
    )(x2d, mats["m1"], mats["b1row"], mats["smap"], mats["m2"], mats["b2row"],
      mats["sd"], mats["su"], mats["asel"], mats["esel"],
      mats["wlin_row"], mats["blin"])
    return out


# ------------------------------------------------------------------- pure-JAX reference

def _leaky(x):
    return jnp.where(x > 0, x, 0.2 * x)


def d_block_reference(x, ref, initial_block):
    dn = ("NCHW", "OIHW", "NCHW")
    if initial_block:
        std = jnp.std(x, axis=0, ddof=1)          # torch.std over batch (unbiased)
        m = jnp.mean(std)
        B, _, H, W = x.shape
        x = jnp.concatenate([x, jnp.full((B, 1, H, W), m, x.dtype)], axis=1)
        pad2 = [(0, 0), (0, 0)]
    else:
        pad2 = [(1, 1), (1, 1)]
    y = lax.conv_general_dilated(x, ref["we1"], (1, 1), [(1, 1), (1, 1)],
                                 dimension_numbers=dn) + ref["b1"][None, :, None, None]
    y = _leaky(y)
    y = lax.conv_general_dilated(y, ref["we2"], (1, 1), pad2,
                                 dimension_numbers=dn) + ref["b2"][None, :, None, None]
    y = _leaky(y)
    if initial_block:
        y = y.reshape(y.shape[0], -1)             # Flatten -> (B, out_ch)
        return y @ ref["wlin"].T + ref["blin"]    # Linear(out_ch, 1) -> (B, 1)
    B, C, H, W = y.shape
    return y.reshape(B, C, H // 2, 2, W // 2, 2).mean(axis=(3, 5))   # AvgPool2d(2,2)


# --------------------------------------------------------------------------------- main

if __name__ == "__main__":
    key = jax.random.PRNGKey(0)
    kx, kp, kxi, kpi = jax.random.split(key, 4)

    # non-initial D_Block: batch=4 (2 images folded per grid step), in_ch=4, out_ch=8, 16x16
    B, Cin, Cout, H, W = 4, 4, 8, 16, 16
    Bt = 2
    x = jax.random.normal(kx, (B, Cin, H, W), jnp.float32)
    x = x.astype(jnp.bfloat16).astype(jnp.float32)        # bf16-representable activations
    mats, refp = make_dblock_params(kp, Cin, Cout, H, W, B,
                                    initial_block=False, batch_tile=Bt)
    out = jax.block_until_ready(d_block_pallas(x, mats))
    ref_out = d_block_reference(x, refp, initial_block=False)
    np.testing.assert_allclose(np.asarray(out), np.asarray(ref_out), rtol=2e-2, atol=2e-2)

    # initial D_Block: batch=4, in_ch=4, out_ch=8, spatial 4x4 (ProGAN final block)
    Hi = Wi = 4
    xi = jax.random.normal(kxi, (B, Cin, Hi, Wi), jnp.float32)
    xi = xi.astype(jnp.bfloat16).astype(jnp.float32)
    mats_i, refp_i = make_dblock_params(kpi, Cin, Cout, Hi, Wi, B, initial_block=True)
    out_i = jax.block_until_ready(d_block_initial_pallas(xi, mats_i))
    ref_i = d_block_reference(xi, refp_i, initial_block=True)
    np.testing.assert_allclose(np.asarray(out_i), np.asarray(ref_i), rtol=2e-2, atol=2e-2)

    print("KERNEL_OK")
</pallas_src>

<mosaic_0001>
module attributes {stable_mosaic.version = 11 : i64} {
  func.func @_dblock_kernel(%arg0: i32, %arg1: memref<32x64xbf16, #tpu.memory_space<vmem>>, %arg2: memref<3x64x128xbf16, #tpu.memory_space<vmem>>, %arg3: memref<1x128xf32, #tpu.memory_space<vmem>>, %arg4: memref<3x128x128xbf16, #tpu.memory_space<vmem>>, %arg5: memref<1x128xf32, #tpu.memory_space<vmem>>, %arg6: memref<32x32xf32, #tpu.memory_space<vmem>>, %arg7: memref<32x32xf32, #tpu.memory_space<vmem>>, %arg8: memref<16x32xf32, #tpu.memory_space<vmem>>, %arg9: memref<128x64xf32, #tpu.memory_space<vmem>>, %arg10: memref<16x64xf32, #tpu.memory_space<vmem>>) attributes {dimension_semantics = [#tpu.dimension_semantics<parallel>], iteration_bounds = array<i64: 2>, scalar_prefetch = 0 : i64, scratch_operands = 0 : i64, tpu.core_type = #tpu.core_type<tc>, window_params = [{transform_indices = @transform_0, window_bounds = array<i64: 32, 64>}, {pipeline_mode = #tpu.pipeline_mode<synchronous>, transform_indices = @transform_1, window_bounds = array<i64: 3, 64, 128>}, {pipeline_mode = #tpu.pipeline_mode<synchronous>, transform_indices = @transform_2, window_bounds = array<i64: 1, 128>}, {pipeline_mode = #tpu.pipeline_mode<synchronous>, transform_indices = @transform_3, window_bounds = array<i64: 3, 128, 128>}, {pipeline_mode = #tpu.pipeline_mode<synchronous>, transform_indices = @transform_4, window_bounds = array<i64: 1, 128>}, {pipeline_mode = #tpu.pipeline_mode<synchronous>, transform_indices = @transform_5, window_bounds = array<i64: 32, 32>}, {pipeline_mode = #tpu.pipeline_mode<synchronous>, transform_indices = @transform_6, window_bounds = array<i64: 32, 32>}, {pipeline_mode = #tpu.pipeline_mode<synchronous>, transform_indices = @transform_7, window_bounds = array<i64: 16, 32>}, {pipeline_mode = #tpu.pipeline_mode<synchronous>, transform_indices = @transform_8, window_bounds = array<i64: 128, 64>}, {transform_indices = @transform_9, window_bounds = array<i64: 16, 64>}]} {
    %c0 = arith.constant 0 : index
    %c0_0 = arith.constant 0 : index
    %0 = vector.load %arg1[%c0, %c0_0] : memref<32x64xbf16, #tpu.memory_space<vmem>>, vector<32x64xbf16>
    %c0_1 = arith.constant 0 : index
    %c0_2 = arith.constant 0 : index
    %1 = vector.load %arg6[%c0_1, %c0_2] : memref<32x32xf32, #tpu.memory_space<vmem>>, vector<32x32xf32>
    %c0_3 = arith.constant 0 : index
    %c0_4 = arith.constant 0 : index
    %2 = vector.load %arg7[%c0_3, %c0_4] : memref<32x32xf32, #tpu.memory_space<vmem>>, vector<32x32xf32>
    %c0_5 = arith.constant 0 : index
    %c0_6 = arith.constant 0 : index
    %c0_7 = arith.constant 0 : index
    %3 = vector.load %arg2[%c0_5, %c0_6, %c0_7] : memref<3x64x128xbf16, #tpu.memory_space<vmem>>, vector<1x64x128xbf16>
    %4 = vector.shape_cast %3 : vector<1x64x128xbf16> to vector<64x128xbf16>
    %cst = arith.constant dense<0.000000e+00> : vector<32x128xf32>
    %5 = tpu.matmul %0, %4, %cst {dimension_numbers = #tpu.dot_dimension_numbers<[1], [0], [0], [1], [0, 0, 1, 1], [], []>} : vector<32x64xbf16>, vector<64x128xbf16>, vector<32x128xf32> -> vector<32x128xf32>
    %c1 = arith.constant 1 : index
    %c0_8 = arith.constant 0 : index
    %c0_9 = arith.constant 0 : index
    %6 = vector.load %arg2[%c1, %c0_8, %c0_9] : memref<3x64x128xbf16, #tpu.memory_space<vmem>>, vector<1x64x128xbf16>
    %7 = vector.shape_cast %6 : vector<1x64x128xbf16> to vector<64x128xbf16>
    %cst_10 = arith.constant dense<0.000000e+00> : vector<32x128xf32>
    %8 = tpu.matmul %0, %7, %cst_10 {dimension_numbers = #tpu.dot_dimension_numbers<[1], [0], [0], [1], [0, 0, 1, 1], [], []>} : vector<32x64xbf16>, vector<64x128xbf16>, vector<32x128xf32> -> vector<32x128xf32>
    %c2 = arith.constant 2 : index
    %c0_11 = arith.constant 0 : index
    %c0_12 = arith.constant 0 : index
    %9 = vector.load %arg2[%c2, %c0_11, %c0_12] : memref<3x64x128xbf16, #tpu.memory_space<vmem>>, vector<1x64x128xbf16>
    %10 = vector.shape_cast %9 : vector<1x64x128xbf16> to vector<64x128xbf16>
    %cst_13 = arith.constant dense<0.000000e+00> : vector<32x128xf32>
    %11 = tpu.matmul %0, %10, %cst_13 {dimension_numbers = #tpu.dot_dimension_numbers<[1], [0], [0], [1], [0, 0, 1, 1], [], []>} : vector<32x64xbf16>, vector<64x128xbf16>, vector<32x128xf32> -> vector<32x128xf32>
    %cst_14 = arith.constant dense<0.000000e+00> : vector<32x128xf32>
    %12 = tpu.matmul %1, %5, %cst_14 {dimension_numbers = #tpu.dot_dimension_numbers<[1], [0], [0], [1], [0, 0, 1, 1], [], []>} : vector<32x32xf32>, vector<32x128xf32>, vector<32x128xf32> -> vector<32x128xf32>
    %13 = arith.addf %8, %12 : vector<32x128xf32>
    %cst_15 = arith.constant dense<0.000000e+00> : vector<32x128xf32>
    %14 = tpu.matmul %2, %11, %cst_15 {dimension_numbers = #tpu.dot_dimension_numbers<[1], [0], [0], [1], [0, 0, 1, 1], [], []>} : vector<32x32xf32>, vector<32x128xf32>, vector<32x128xf32> -> vector<32x128xf32>
    %15 = arith.addf %13, %14 : vector<32x128xf32>
    %c0_16 = arith.constant 0 : index
    %c0_17 = arith.constant 0 : index
    %16 = vector.load %arg3[%c0_16, %c0_17] : memref<1x128xf32, #tpu.memory_space<vmem>>, vector<1x128xf32>
    %17 = vector.broadcast %16 : vector<1x128xf32> to vector<32x128xf32>
    %18 = arith.addf %15, %17 : vector<32x128xf32>
    %cst_18 = arith.constant 0.000000e+00 : f32
    %19 = vector.broadcast %cst_18 : f32 to vector<32x128xf32>
    %20 = arith.cmpf ogt, %18, %19 : vector<32x128xf32>
    %cst_19 = arith.constant 2.000000e-01 : f32
    %21 = vector.broadcast %cst_19 : f32 to vector<32x128xf32>
    %22 = arith.mulf %21, %18 : vector<32x128xf32>
    %23 = arith.select %20, %18, %22 : vector<32x128xi1>, vector<32x128xf32>
    %24 = arith.truncf %23 : vector<32x128xf32> to vector<32x128xbf16>
    %c0_20 = arith.constant 0 : index
    %c0_21 = arith.constant 0 : index
    %c0_22 = arith.constant 0 : index
    %25 = vector.load %arg4[%c0_20, %c0_21, %c0_22] : memref<3x128x128xbf16, #tpu.memory_space<vmem>>, vector<1x128x128xbf16>
    %26 = vector.shape_cast %25 : vector<1x128x128xbf16> to vector<128x128xbf16>
    %cst_23 = arith.constant dense<0.000000e+00> : vector<32x128xf32>
    %27 = tpu.matmul %24, %26, %cst_23 {dimension_numbers = #tpu.dot_dimension_numbers<[1], [0], [0], [1], [0, 0, 1, 1], [], []>} : vector<32x128xbf16>, vector<128x128xbf16>, vector<32x128xf32> -> vector<32x128xf32>
    %c1_24 = arith.constant 1 : index
    %c0_25 = arith.constant 0 : index
    %c0_26 = arith.constant 0 : index
    %28 = vector.load %arg4[%c1_24, %c0_25, %c0_26] : memref<3x128x128xbf16, #tpu.memory_space<vmem>>, vector<1x128x128xbf16>
    %29 = vector.shape_cast %28 : vector<1x128x128xbf16> to vector<128x128xbf16>
    %cst_27 = arith.constant dense<0.000000e+00> : vector<32x128xf32>
    %30 = tpu.matmul %24, %29, %cst_27 {dimension_numbers = #tpu.dot_dimension_numbers<[1], [0], [0], [1], [0, 0, 1, 1], [], []>} : vector<32x128xbf16>, vector<128x128xbf16>, vector<32x128xf32> -> vector<32x128xf32>
    %c2_28 = arith.constant 2 : index
    %c0_29 = arith.constant 0 : index
    %c0_30 = arith.constant 0 : index
    %31 = vector.load %arg4[%c2_28, %c0_29, %c0_30] : memref<3x128x128xbf16, #tpu.memory_space<vmem>>, vector<1x128x128xbf16>
    %32 = vector.shape_cast %31 : vector<1x128x128xbf16> to vector<128x128xbf16>
    %cst_31 = arith.constant dense<0.000000e+00> : vector<32x128xf32>
    %33 = tpu.matmul %24, %32, %cst_31 {dimension_numbers = #tpu.dot_dimension_numbers<[1], [0], [0], [1], [0, 0, 1, 1], [], []>} : vector<32x128xbf16>, vector<128x128xbf16>, vector<32x128xf32> -> vector<32x128xf32>
    %cst_32 = arith.constant dense<0.000000e+00> : vector<32x128xf32>
    %34 = tpu.matmul %1, %27, %cst_32 {dimension_numbers = #tpu.dot_dimension_numbers<[1], [0], [0], [1], [0, 0, 1, 1], [], []>} : vector<32x32xf32>, vector<32x128xf32>, vector<32x128xf32> -> vector<32x128xf32>
    %35 = arith.addf %30, %34 : vector<32x128xf32>
    %cst_33 = arith.constant dense<0.000000e+00> : vector<32x128xf32>
    %36 = tpu.matmul %2, %33, %cst_33 {dimension_numbers = #tpu.dot_dimension_numbers<[1], [0], [0], [1], [0, 0, 1, 1], [], []>} : vector<32x32xf32>, vector<32x128xf32>, vector<32x128xf32> -> vector<32x128xf32>
    %37 = arith.addf %35, %36 : vector<32x128xf32>
    %c0_34 = arith.constant 0 : index
    %c0_35 = arith.constant 0 : index
    %38 = vector.load %arg5[%c0_34, %c0_35] : memref<1x128xf32, #tpu.memory_space<vmem>>, vector<1x128xf32>
    %39 = vector.broadcast %38 : vector<1x128xf32> to vector<32x128xf32>
    %40 = arith.addf %37, %39 : vector<32x128xf32>
    %cst_36 = arith.constant 0.000000e+00 : f32
    %41 = vector.broadcast %cst_36 : f32 to vector<32x128xf32>
    %42 = arith.cmpf ogt, %40, %41 : vector<32x128xf32>
    %cst_37 = arith.constant 2.000000e-01 : f32
    %43 = vector.broadcast %cst_37 : f32 to vector<32x128xf32>
    %44 = arith.mulf %43, %40 : vector<32x128xf32>
    %45 = arith.select %42, %40, %44 : vector<32x128xi1>, vector<32x128xf32>
    %c0_38 = arith.constant 0 : index
    %c0_39 = arith.constant 0 : index
    %46 = vector.load %arg8[%c0_38, %c0_39] : memref<16x32xf32, #tpu.memory_space<vmem>>, vector<16x32xf32>
    %c0_40 = arith.constant 0 : index
    %c0_41 = arith.constant 0 : index
    %47 = vector.load %arg9[%c0_40, %c0_41] : memref<128x64xf32, #tpu.memory_space<vmem>>, vector<128x64xf32>
    %cst_42 = arith.constant dense<0.000000e+00> : vector<32x64xf32>
    %48 = tpu.matmul %45, %47, %cst_42 {dimension_numbers = #tpu.dot_dimension_numbers<[1], [0], [0], [1], [0, 0, 1, 1], [], []>} : vector<32x128xf32>, vector<128x64xf32>, vector<32x64xf32> -> vector<32x64xf32>
    %cst_43 = arith.constant dense<0.000000e+00> : vector<16x64xf32>
    %49 = tpu.matmul %46, %48, %cst_43 {dimension_numbers = #tpu.dot_dimension_numbers<[1], [0], [0], [1], [0, 0, 1, 1], [], []>} : vector<16x32xf32>, vector<32x64xf32>, vector<16x64xf32> -> vector<16x64xf32>
    %c0_44 = arith.constant 0 : index
    %c0_45 = arith.constant 0 : index
    %50 = vector.load %arg10[%c0_44, %c0_45] : memref<16x64xf32, #tpu.memory_space<vmem>>, vector<16x64xf32>
    tpu.vector_store %arg10[%c0_44, %c0_45], %49 {strides = array<i32>} : memref<16x64xf32, #tpu.memory_space<vmem>>, vector<16x64xf32>,
    return
  }
  func.func @transform_0(%arg0: i32) -> (i32, i32) {
    %c0_i32 = arith.constant 0 : i32
    %c0_i32_0 = arith.constant 0 : i32
    return %arg0, %c0_i32 : i32, i32
  }
  func.func @transform_1(%arg0: i32) -> (i32, i32, i32) {
    %c0_i32 = arith.constant 0 : i32
    %c0_i32_0 = arith.constant 0 : i32
    %c0_i32_1 = arith.constant 0 : i32
    %c0_i32_2 = arith.constant 0 : i32
    return %c0_i32, %c0_i32_0, %c0_i32_1 : i32, i32, i32
  }
  func.func @transform_2(%arg0: i32) -> (i32, i32) {
    %c0_i32 = arith.constant 0 : i32
    %c0_i32_0 = arith.constant 0 : i32
    %c0_i32_1 = arith.constant 0 : i32
    return %c0_i32, %c0_i32_0 : i32, i32
  }
  func.func @transform_3(%arg0: i32) -> (i32, i32, i32) {
    %c0_i32 = arith.constant 0 : i32
    %c0_i32_0 = arith.constant 0 : i32
    %c0_i32_1 = arith.constant 0 : i32
    %c0_i32_2 = arith.constant 0 : i32
    return %c0_i32, %c0_i32_0, %c0_i32_1 : i32, i32, i32
  }
  func.func @transform_4(%arg0: i32) -> (i32, i32) {
    %c0_i32 = arith.constant 0 : i32
    %c0_i32_0 = arith.constant 0 : i32
    %c0_i32_1 = arith.constant 0 : i32
    return %c0_i32, %c0_i32_0 : i32, i32
  }
  func.func @transform_5(%arg0: i32) -> (i32, i32) {
    %c0_i32 = arith.constant 0 : i32
    %c0_i32_0 = arith.constant 0 : i32
    %c0_i32_1 = arith.constant 0 : i32
    return %c0_i32, %c0_i32_0 : i32, i32
  }
  func.func @transform_6(%arg0: i32) -> (i32, i32) {
    %c0_i32 = arith.constant 0 : i32
    %c0_i32_0 = arith.constant 0 : i32
    %c0_i32_1 = arith.constant 0 : i32
    return %c0_i32, %c0_i32_0 : i32, i32
  }
  func.func @transform_7(%arg0: i32) -> (i32, i32) {
    %c0_i32 = arith.constant 0 : i32
    %c0_i32_0 = arith.constant 0 : i32
    %c0_i32_1 = arith.constant 0 : i32
    return %c0_i32, %c0_i32_0 : i32, i32
  }
  func.func @transform_8(%arg0: i32) -> (i32, i32) {
    %c0_i32 = arith.constant 0 : i32
    %c0_i32_0 = arith.constant 0 : i32
    %c0_i32_1 = arith.constant 0 : i32
    return %c0_i32, %c0_i32_0 : i32, i32
  }
  func.func @transform_9(%arg0: i32) -> (i32, i32) {
    %c0_i32 = arith.constant 0 : i32
    %c0_i32_0 = arith.constant 0 : i32
    return %arg0, %c0_i32 : i32, i32
  }
}

</mosaic_0001>

<bundles_post_ra>
// kernel: tpu_custom_call.1
= control target key start
LH: loop header
LB: loop body
LE: loop exit
PB: predicated region body
PF: predicated region fallthrough
CT: control target
= control target key end

     0   :  { %s3070_s0 = inlined_call_operand.hbm [shape: bf16[64,64], index: 0, kind: input, shape index: {}]   ;;  %s3071_s1 = inlined_call_operand.hbm [shape: bf16[3,64,128], index: 1, kind: input, shape index: {}]   ;;  %s3072_s2 = inlined_call_operand.vmem [shape: f32[1,128], index: 2, kind: input, shape index: {}]   ;;  %s3073_s3 = inlined_call_operand.vmem [shape: bf16[3,128,128], index: 3, kind: input, shape index: {}]   ;;  %s3074_s4 = inlined_call_operand.vmem [shape: f32[1,128], index: 4, kind: input, shape index: {}]   ;;  %s3075_s5 = inlined_call_operand.hbm [shape: f32[32,32], index: 5, kind: input, shape index: {}]   ;;  %s3076_s6 = inlined_call_operand.hbm [shape: f32[32,32], index: 6, kind: input, shape index: {}]   ;;  %s3077_s7 = inlined_call_operand.vmem [shape: f32[16,32], index: 7, kind: input, shape index: {}]   ;;  %s3078_s8 = inlined_call_operand.vmem [shape: f32[128,64], index: 8, kind: input, shape index: {}]   ;;  %s3079_s9 = inlined_call_operand.hbm [shape: f32[32,64], index: 9, kind: output, shape index: {}]  }
   0x1   :  { %3088 = sst [smem:[#allocation17_spill]] %s3071_s1 }
   0x2   :  { %3089 = sst [smem:[#allocation18_spill]] %s3079_s9 }
   0x3   :  { %14 = vsyncpa [#allocation3], 0 }
   0x4   :  { %16 = vsyncpa [#allocation3 + $0x1], 0 }
   0x5   :  { %17 = vsyncpa [#allocation6], 0 }
   0x6   :  { %18 = vsyncpa [#allocation9], 0 }
   0x7   :  { %19 = vsyncpa [#allocation4], 0 }
   0x8   :  { %21 = vsyncpa [#allocation4 + $0x1], 0  ;;  %s2605_s30 = smov 0   ;;  %s2607_s10 = smov 0  }
   0x9   :  { %s2609_s11 = smov 0   ;;  %s2611_s12 = smov 0  }
   0xa LB: > { %3090 = sst [smem:[#allocation15_spill]] %s2530_s30  ;;  %s2626_s13 = sadd.s32 4294967295, %s2542_s12   ;;  %s2542_s12 = sphi %s2611_s12, %s3118_s12   ;;  %s2538_s11 = sphi %s2609_s11, %s3117_s11   ;;  %s2534_s10 = sphi %s2607_s10, %s3116_s10   ;;  %s2530_s30 = sphi %s2605_s30, %s3115_s30  }
   0xb   : > { %s1736_s14 = sadd.s32 4294967294, %s2542_s12   ;;  %p47_p0 = scmp.ne.s32.totalorder %s2534_s10, %s2530_s30 }
   0xc   : > { %p3080_p1 = scmp.eq.s32.totalorder %s2626_s13, 0  ;;  %p245_p3 = scmp.eq.s32.totalorder %s1736_s14, 1 }
   0xd   : > { %p1737_p5 = scmp.ge.s32.totalorder %s2542_s12, 1  ;;  %p252_p7 = scmp.lt.s32.totalorder %s2542_s12, 3 }
   0xe   : > { %p2635_p4 = por %p3080_p1, %p47_p0  ;;  %p2640_p6 = por %p245_p3, %p47_p0 }
   0xf   : > { %p2645_p8 = pnand %p1737_p5, %p252_p7  ;;  %s2544_s18 = smov [#allocation5]  }
  0x10   : > { %s3091_s15 = scalar_select %p2635_p4, 1, 0 }
  0x11   : > { %s3092_s16 = scalar_select %p2640_p6, 1, 0 }
  0x12   : > { %s3094_s17 = scalar_select %p2645_p8, 1, 0 }
  0x13   : > { %3093 = sst [smem:[#allocation16_spill]] %s3092_s16  ;;  %s264_s19 = sshll.u32 %s2544_s18, 4  ;;  %s2649_s19 = int_to_ptr.vmem [resolvable:$true] %s264_s19 }
  0x14   : > { %p2249_p9 = pneg %p2645_p8  ;;  %s2545_s21 = smov [#allocation7]  }
  0x15   : > { %s286_s22 = sshll.u32 %s2545_s21, 4  ;;  %s3096_s1 = sld [smem:[#allocation17_spill]]  ;;  %s2660_s22 = int_to_ptr.vmem [resolvable:$true] %s286_s22 }
  0x16   : > { %p2656_p11 = pnand %p2249_p9, %p3080_p1 }
  0x18   : > { %p2670_p13 = pneg %p2656_p11 }
  0x1b   : > { %s2354_s25 = scalar_lea.hbm %s3096_s1, 1536 }
  0x1c   : > { %p2355_p12 = scmp.ne.s32.totalorder %s3096_s1, %s2354_s25  ;;  %p2361_p5 = scmp.lt.u32.totalorder %s2354_s25, %s3096_s1 }
  0x1e   : > { %p2357_p0 = pnand %p2670_p13, %p2355_p12 }
  0x20   : > { %p2358_p3 = pneg %p2357_p0 }
  0x22   : > { %p2363_p7 = pnand %p2361_p5, %p2358_p3 }
  0x24   : > { %2366 = shalt.err (!%p2363_p7)
}
  0x25   : > { %s2367_s18 = scalar_lea.vmem %s2649_s19, 1536  ;;  %p2375_p2 = scmp.lt.s32.totalorder %s2649_s19, %s2649_s19 }
  0x26   : > { %p2368_p9 = scmp.ne.s32.totalorder %s2649_s19, %s2367_s18  ;;  %p2376_p6 = scmp.lt.s32.totalorder %s2367_s18, %s2367_s18 }
  0x28   : > { %p2370_p10 = pnand %p2368_p9, %p2670_p13  ;;  %p2377_p12 = por %p2376_p6, %p2375_p2 }
  0x2a   : > { %p2371_p1 = pneg %p2370_p10 }
  0x2c   : > { %p2378_p0 = pnand %p2377_p12, %p2371_p1 }
  0x2e   : > { %2381 = shalt.err (!%p2378_p0)
}
  0x2f   : > { %s3083_s21 = smov 64   ;;  %s3084_s23 = smov 4  }
  0x30   : > { %2252 = dma.hbm_to_vmem [thread:$0]  (!%p2656_p11), %s3096_s1, 1536, %s2649_s19, [#allocation6], %s3083_s21, %s3083_s21, %s3084_s23  }
  0x31   : > { %s2382_s29 = scalar_lea.hbm %s3075_s5, 512 }
  0x32   : > { %p2383_p1 = scmp.ne.s32.totalorder %s3075_s5, %s2382_s29  ;;  %p2389_p10 = scmp.lt.u32.totalorder %s2382_s29, %s3075_s5 }
  0x34   : > { %p2385_p2 = pnand %p2383_p1, %p2670_p13 }
  0x36   : > { %p2386_p6 = pneg %p2385_p2 }
  0x38   : > { %p2391_p3 = pnand %p2389_p10, %p2386_p6 }
  0x3a   : > { %2394 = shalt.err (!%p2391_p3)
}
  0x3b   : > { %s2395_s19 = scalar_lea.vmem %s2660_s22, 512  ;;  %p2403_p12 = scmp.lt.s32.totalorder %s2660_s22, %s2660_s22 }
  0x3c   : > { %p2396_p5 = scmp.ne.s32.totalorder %s2660_s22, %s2395_s19  ;;  %p2404_p0 = scmp.lt.s32.totalorder %s2395_s19, %s2395_s19 }
  0x3e   : > { %p2398_p7 = pnand %p2396_p5, %p2670_p13  ;;  %p2405_p1 = por %p2404_p0, %p2403_p12 }
  0x40   : > { %p2399_p9 = pneg %p2398_p7 }
  0x42   : > { %p2406_p2 = pnand %p2405_p1, %p2399_p9 }
  0x44   : > { %2409 = shalt.err (!%p2406_p2)
}
  0x45   : > { %s2548_s24 = smov 128   ;;  %s2549_s30 = smov 8  }
  0x46   : > { %2255 = dma.hbm_to_vmem [thread:$0]  (!%p2656_p11), %s3075_s5, 512, %s2660_s22, [#allocation6], %s2548_s24, %s2548_s24, %s2549_s30  }
  0x47   : > { %s2550_s26 = smov [#allocation8]   ;;  %s2718_s29 = sadd.s32 1, %s2542_s12  }
  0x48   : > { %s299_s27 = sshll.u32 %s2550_s26, 4  ;;  %s2410_s19 = scalar_lea.hbm %s3076_s6, 512  ;;  %s300_s27 = int_to_ptr.vmem [resolvable:$true] %s299_s27 }
  0x49   : > { %p2411_p6 = scmp.ne.s32.totalorder %s3076_s6, %s2410_s19  ;;  %p2417_p5 = scmp.lt.u32.totalorder %s2410_s19, %s3076_s6 }
  0x4b   : > { %p2413_p10 = pnand %p2411_p6, %p2670_p13 }
  0x4d   : > { %p2414_p3 = pneg %p2413_p10 }
  0x4f   : > { %p2419_p7 = pnand %p2417_p5, %p2414_p3 }
  0x51   : > { %2422 = shalt.err (!%p2419_p7)
}
  0x52   : > { %s2423_s22 = scalar_lea.vmem %s300_s27, 512  ;;  %p2431_p1 = scmp.lt.s32.totalorder %s300_s27, %s300_s27 }
  0x53   : > { %p2424_p9 = scmp.ne.s32.totalorder %s300_s27, %s2423_s22  ;;  %p2432_p2 = scmp.lt.s32.totalorder %s2423_s22, %s2423_s22 }
  0x55   : > { %p2426_p12 = pnand %p2424_p9, %p2670_p13  ;;  %p2433_p4 = por %p2432_p2, %p2431_p1 }
  0x57   : > { %p2427_p0 = pneg %p2426_p12 }
  0x59   : > { %p2434_p8 = pnand %p2433_p4, %p2427_p0 }
  0x5b   : > { %2437 = shalt.err (!%p2434_p8)
}
  0x5c   : > { %2258 = dma.hbm_to_vmem [thread:$0]  (!%p2656_p11), %s3076_s6, 512, %s300_s27, [#allocation9], %s2548_s24, %s2548_s24, %s2549_s30  }
  0x5d   : > { %s31_s1 = ssub.s32 %s2542_s12, %s2718_s29  ;;  %s34_s9 = sadd.s32 1, %s2538_s11 }
  0x5e   : > { %p32_p4 = scmp.eq.s32.totalorder %s31_s1, 0  ;;  %p41_p8 = scmp.ne.s32.totalorder %s2538_s11, %s2534_s10 }
  0x5f   : > { %p42_p13 = scmp.eq.s32.totalorder %s2542_s12, 0  ;;  %p2270_p6 = scmp.lt.s32.totalorder %s2542_s12, 2 }
  0x60   : > { %s2746_s20 = scalar_select %p32_p4, %s2538_s11, %s34_s9  }
  0x61   : > { %p43_p10 = por %p42_p13, %p41_p8  ;;  %p3098_p3 = scmp.eq.s32.totalorder %s2626_s13, 1 }
  0x62   : > { %s319_s16 = sand.u32 1, %s2538_s11   ;;  %s1852_s25 = sshll.u32 %s2542_s12, 8 }
  0x63   : > { %p2750_p5 = por %p3098_p3, %p41_p8  ;;  %s1742_s26 = sshll.u32 %s319_s16, 4 }
  0x64   : > { %s2759_s24 = scalar_lea.hbm %s3070_s0, %s1852_s25  ;;  %s323_s30 = scalar_lea.vmem [#allocation2], %s1742_s26 }
  0x65   : > { %s330_s27 = sshll.u32 %s323_s30, 4  ;;  %p2761_p11 = pnand %p2270_p6, %p43_p10  ;;  %s2765_s27 = int_to_ptr.vmem [resolvable:$true] %s330_s27 }
  0x66   : > { %s2767_s22 = scalar_lea.sflag [#allocation3], %s319_s16  ;;  %s2438_s21 = scalar_lea.hbm %s2759_s24, 256 }
  0x67   : > { %p2439_p7 = scmp.ne.s32.totalorder %s2759_s24, %s2438_s21  ;;  %p2440_p9 = pneg %p2761_p11 }
  0x68   : > { %s2443_s9 = scalar_lea.hbm %s3070_s0, 512  ;;  %p2444_p1 = scmp.lt.u32.totalorder %s2759_s24, %s3070_s0 }
  0x69   : > { %p2441_p12 = pnand %p2440_p9, %p2439_p7  ;;  %p2445_p2 = scmp.lt.u32.totalorder %s2443_s9, %s2438_s21 }
  0x6a   : > { %p2447_p8 = scmp.lt.u32.totalorder %s2438_s21, %s2759_s24 }
  0x6b   : > { %p2442_p0 = pneg %p2441_p12  ;;  %p2446_p4 = por %p2445_p2, %p2444_p1 }
  0x6d   : > { %p2448_p13 = por %p2447_p8, %p2446_p4 }
  0x6f   : > { %p2449_p6 = pnand %p2448_p13, %p2442_p0 }
  0x71   : > { %2452 = shalt.err (!%p2449_p6)
}
  0x72   : > { %s2453_s16 = scalar_lea.vmem %s2765_s27, 256  ;;  %s2551_s14 = smov [#allocation2]  }
  0x73   : > { %p2454_p10 = scmp.ne.s32.totalorder %s2765_s27, %s2453_s16  ;;  %s2458_s18 = sshll.u32 %s2551_s14, 4  ;;  %s2459_s18 = int_to_ptr.vmem [resolvable:$false] %s2458_s18 }
  0x74   : > { %s2460_s30 = scalar_lea.vmem %s2459_s18, 512  ;;  %p2461_p12 = scmp.lt.s32.totalorder %s2765_s27, %s2459_s18 }
  0x75   : > { %p2456_p3 = pnand %p2454_p10, %p2440_p9  ;;  %p2462_p1 = scmp.lt.s32.totalorder %s2460_s30, %s2453_s16 }
  0x77   : > { %p2457_p7 = pneg %p2456_p3  ;;  %p2463_p2 = por %p2462_p1, %p2461_p12 }
  0x79   : > { %p2464_p4 = pnand %p2463_p2, %p2457_p7 }
  0x7b   : > { %2467 = shalt.err (!%p2464_p4)
}
  0x7c   : > { %s3101_s21 = smov 4   ;;  %s3102_s23 = smov 64  }
  0x7d   : > { %2262 = dma.hbm_to_vmem [thread:$0]  (!%p2761_p11), %s2759_s24, 256, %s2765_s27, %s2767_s22, %s3102_s23, %s3102_s23, %s3101_s21  }
  0x7e   : > { %p3103_p9 = scmp.ne.s32.totalorder %s3094_s17, 0 }
  0x7f   : > { %s2801_s1 = sand.u32 (!%p3103_p9), 1, %s2534_s10   ;;  %p3104_p0 = scmp.ne.s32.totalorder (!%p3103_p9), %s3091_s15, 0 }
  0x80   : > { %342 = sbr.rel (%p3103_p9) target bundleno = 1533 (0x5fd), region = 56  ;;  %s1746_s9 = sshll.u32 (!%p3103_p9), %s2801_s1, 4 }
  0x81   : > { %s345_s25 = scalar_lea.sflag (!%p3103_p9), [#allocation3], %s2801_s1  ;;  %s2807_s19 = scalar_lea.vmem (!%p3103_p9), [#allocation2], %s1746_s9 }
  0x87   : > { %2513 = dma.done.wait (%p3104_p0), %s345_s25, 256  }
  0x88   : > { %2515 = vsyncadd (%p3104_p0), %s345_s25, 4294967040  ;;  %p3105_p11 = scmp.eq.s32.totalorder %s2626_s13, 0 }
  0x8a   : > { %2517 = dma.done.wait (%p3105_p11), [#allocation6], 2048   ;;  %p3106_p8 = pmov %p3105_p11 }
  0x8c   : > { %2519 = vsyncadd (%p3106_p8), [#allocation6], 4294965248  ;;  %p3107_p13 = pmov %p3106_p8 }
  0x8d   : > { %p3108_p6 = pmov %p3106_p8 }
  0x8e   : > { %2521 = dma.done.wait (%p3107_p13), [#allocation9], 512  }
  0x8f   : > { %2523 = vsyncadd (%p3108_p6), [#allocation9], 4294966784  ;;  %v2316_v0 = vld [vmem:[#allocation5] sm:$0xff]   ;;  %v2317_v1 = vld [vmem:[#allocation5 + $0x8] sm:$0xff]   ;;  %vm452_vm0 = vcmask 523264   ;;  %vm599_vm1 = vcmask 261120  }
  0x90   : > { %1960 = vmatprep.subr.bf16.mxu0 %v2316_v0  ;;  %v2319_v2 = vld [vmem:[#allocation5 + $0x40] sm:$0xff]   ;;  %v2318_v3 = vld [vmem:[#allocation5 + $0x10] sm:$0xff]   ;;  %v2321_v4 = vld [vmem:[#allocation5 + $0x48] sm:$0xff]   ;;  %s394_s22 = scalar_lea.vmem [#allocation10], %s1746_s9  ;;  %s1853_s16 = sshll.u32 %s2626_s13, 8 }
  0x91   : > { %1961 = vmatpush3.bf16.msra.mxu0 %v2316_v0  ;;  %1972 = vmatprep.subr.bf16.mxu1 %v2319_v2  ;;  %v2822_v5 = vld [vmem:[%s2807_s19] sm:$0xff]   ;;  %v2320_v6 = vld [vmem:[#allocation5 + $0x18] sm:$0xff]   ;;  %v2839_v25 = vld [vmem:[#allocation7 + $0x8] sm:$0xff]  ;;  %s1634_s26 = sshll.u32 %s394_s22, 4  ;;  %s3109_s30 = sld [smem:[#allocation18_spill]]  ;;  %s3019_s26 = int_to_ptr.vmem [resolvable:$true] %s1634_s26 }
  0x92   : > { %1962 = vmatprep.subr.bf16.mxu0 %v2317_v1  ;;  %1973 = vmatpush3.bf16.msra.mxu1 %v2319_v2  ;;  %v2324_v7 = vld [vmem:[#allocation5 + $0x50] sm:$0xff]   ;;  %v2325_v8 = vld [vmem:[#allocation5 + $0x58] sm:$0xff]   ;;  %v2831_v10 = vld [vmem:[#allocation7] sm:$0xff]  ;;  %s1621_s25 = scalar_lea.sflag [#allocation4], %s2801_s1  ;;  %s2468_s9 = scalar_lea.vmem %s3019_s26, 256 }
  0x93   : > { %1974 = vmatprep.subr.bf16.mxu1 %v2321_v4  ;;  %1968 = vmatprep.mubr.msk.bf16.mxu0 %vm452_vm0, %v2822_v5  ;;  %v2323_v9 = vld [vmem:[%s2807_s19 + $0x8] sm:$0xff]   ;;  %v2835_v11 = vld [vmem:[#allocation8] sm:$0xff]  ;;  %v2841_v27 = vld [vmem:[#allocation7 + $0x10] sm:$0xff]  ;;  %p2469_p10 = scmp.ne.s32.totalorder %s3019_s26, %s2468_s9  ;;  %s2552_s13 = smov [#allocation10]  }
  0x94   : > { %1980 = vmatprep.mubr.msk.bf16.mxu1 %vm452_vm0, %v2822_v5  ;;  %v2326_v24 = vld [vmem:[#allocation5 + $0x20] sm:$0xff]   ;;  %v2327_v26 = vld [vmem:[#allocation5 + $0x28] sm:$0xff]   ;;  %v2849_v29 = vld [vmem:[#allocation7 + $0x18] sm:$0xff]  ;;  %s2472_s19 = sshll.u32 %s2552_s13, 4  ;;  %s2473_s19 = int_to_ptr.vmem [resolvable:$false] %s2472_s19 }
  0x95   : > { %1963 = vmatpush3.bf16.msra.mxu0 %v2317_v1  ;;  %v2845_v28 = vld [vmem:[#allocation8 + $0x8] sm:$0xff]  ;;  %v2851_v30 = vld [vmem:[#allocation8 + $0x10] sm:$0xff]  ;;  %v2859_v32 = vld [vmem:[#allocation8 + $0x18] sm:$0xff]  ;;  %p2470_p3 = pnand %p2469_p10, %p2750_p5  ;;  %s2474_s15 = scalar_lea.vmem %s2473_s19, 512 }
  0x96   : > { %1964 = vmatprep.subr.bf16.mxu0 %v2318_v3  ;;  %1975 = vmatpush3.bf16.msra.mxu1 %v2321_v4  ;;  %v2328_v31 = vld [vmem:[#allocation5 + $0x30] sm:$0xff]   ;;  %v2329_v33 = vld [vmem:[#allocation5 + $0x38] sm:$0xff]   ;;  %v2330_v34 = vld [vmem:[%s3073_s3 + $0x80] sm:$0xff]   ;;  %p2475_p12 = scmp.lt.s32.totalorder %s3019_s26, %s2473_s19  ;;  %p2476_p1 = scmp.lt.s32.totalorder %s2474_s15, %s2468_s9 }
  0x97   : > { %1976 = vmatprep.subr.bf16.mxu1 %v2324_v7  ;;  %v2331_v35 = vld [vmem:[%s3073_s3] sm:$0xff]   ;;  %v2332_v36 = vld [vmem:[%s3073_s3 + $0x88] sm:$0xff]   ;;  %v2334_v38 = vld [vmem:[%s3073_s3 + $0x90] sm:$0xff]   ;;  %s3110_s21 = smov %s3109_s30  ;;  %s3024_s23 = scalar_lea.hbm %s3109_s30, %s1853_s16 }
  0x98   : > { %v2333_v37 = vld [vmem:[%s3073_s3 + $0x8] sm:$0xff]   ;;  %v2335_v39 = vld [vmem:[%s3073_s3 + $0x10] sm:$0xff]   ;;  %v2336_v40 = vld [vmem:[%s3073_s3 + $0x98] sm:$0xff]   ;;  %p2471_p7 = pneg %p2470_p3  ;;  %p2477_p2 = por %p2476_p1, %p2475_p12 }
  0x99   : > { %1965 = vmatpush3.bf16.msra.mxu0 %v2318_v3  ;;  %v2337_v41 = vld [vmem:[%s3073_s3 + $0x18] sm:$0xff]   ;;  %v2338_v42 = vld [vmem:[%s3073_s3 + $0xa0] sm:$0xff]   ;;  %v2340_v44 = vld [vmem:[%s3073_s3 + $0xa8] sm:$0xff]  }
  0x9a   : > { %1966 = vmatprep.subr.bf16.mxu0 %v2320_v6  ;;  %1977 = vmatpush3.bf16.msra.mxu1 %v2324_v7  ;;  %v2339_v43 = vld [vmem:[%s3073_s3 + $0x20] sm:$0xff]   ;;  %v2341_v45 = vld [vmem:[%s3073_s3 + $0x28] sm:$0xff]   ;;  %v2342_v46 = vld [vmem:[%s3073_s3 + $0xb0] sm:$0xff]   ;;  %p2478_p4 = pnand %p2477_p2, %p2471_p7 }
  0x9b   : > { %1978 = vmatprep.subr.bf16.mxu1 %v2325_v8  ;;  %v2343_v47 = vld [vmem:[%s3073_s3 + $0x30] sm:$0xff]   ;;  %v2344_v48 = vld [vmem:[%s3073_s3 + $0xb8] sm:$0xff]   ;;  %v2346_v50 = vld [vmem:[%s3073_s3 + $0x40] sm:$0xff]  }
  0x9c   : > { %v2345_v49 = vld [vmem:[%s3073_s3 + $0x38] sm:$0xff]   ;;  %v1779_v63 = vld [vmem:[%s3072_s2] ss:$0 sm:$0xff] }
  0x9d   : > { %1967 = vmatpush3.bf16.msra.mxu0 %v2320_v6 }
  0x9e   : > { %1979 = vmatpush3.bf16.msra.mxu1 %v2325_v8 }
  0xa0   : > { %1969 = vmatmul.mubr.msk.bf16.vlgmr.msra.gmra.mrb[0].mxu0 %vm452_vm0, %v2323_v9 }
  0xa1   : > { %1981 = vmatmul.mubr.msk.bf16.vlgmr.msra.gmra.mrb[0].mxu1 %vm452_vm0, %v2323_v9  ;;  %2018 = vmatprep.mubr.msk.f32.mxu0 %vm599_vm1, %v2835_v11 }
  0xa2   : > { %1992 = vmatprep.mubr.msk.f32.mxu1 %vm599_vm1, %v2831_v10 }
 0x173   : > { %v1970_v12 = vpop.f32.mrb[0].mxu0 }
 0x174   : > { %v493_v13 = vpop.f32.mrb[1].mxu0  ;;  %v1982_v17 = vpop.f32.mrb[0].mxu1 }
 0x175   : > { %v1971_v14 = vpop.f32.mrb[2].mxu0  ;;  %v584_v19 = vpop.f32.mrb[1].mxu1 }
 0x176   : > { %v2165_v15 = vpack.c.bf16 %v1971_v14, %v1970_v12  ;;  %v496_v16 = vpop.f32.mrb[3].mxu0  ;;  %v1983_v20 = vpop.f32.mrb[2].mxu1 }
 0x177   : > { %v2161_v18 = vpack.c.bf16 %v496_v16, %v493_v13  ;;  %v2173_v21 = vpack.c.bf16 %v1983_v20, %v1982_v17  ;;  %v587_v22 = vpop.f32.mrb[3].mxu1 }
 0x178   : > { %v2169_v23 = vpack.c.bf16 %v587_v22, %v584_v19 }
 0x179   : > { %2162 = vmatprep.subr.bf16.mxu1 %v2161_v18 }
 0x17a   : > { %2164 = vmatpush3.bf16.msra.mxu1 %v2161_v18  ;;  %2170 = vmatprep.subr.bf16.mxu0 %v2169_v23 }
 0x17b   : > { %2166 = vmatprep.subr.bf16.mxu1 %v2165_v15  ;;  %2172 = vmatpush3.bf16.msra.mxu0 %v2169_v23 }
 0x17c   : > { %2174 = vmatprep.subr.bf16.mxu0 %v2173_v21 }
 0x17e   : > { %2168 = vmatpush3.bf16.msra.mxu1 %v2165_v15 }
 0x17f   : > { %1998 = vmatprep.subr.bf16.mxu1 %v2326_v24  ;;  %2176 = vmatpush3.bf16.msra.mxu0 %v2173_v21 }
 0x180   : > { %2024 = vmatprep.subr.bf16.mxu0 %v2331_v35 }
 0x181   : > { %1993 = vmatmul.mubr.msk.f32.vlgmr.msra.gmra.mrb[4].mxu1 %vm599_vm1, %v2839_v25 }
 0x182   : > { %1999 = vmatpush3.bf16.msra.mxu1 %v2326_v24  ;;  %1995 = vmatprep.mubr.msk.f32.mxu1 %vm599_vm1, %v2841_v27  ;;  %v2347_v24 = vld [vmem:[%s3073_s3 + $0x48] sm:$0xff]  }
 0x183   : > { %2000 = vmatprep.subr.bf16.mxu1 %v2327_v26  ;;  %2019 = vmatmul.mubr.msk.f32.vlgmr.msra.gmra.mrb[4].mxu0 %vm599_vm1, %v2845_v28 }
 0x184   : > { %2021 = vmatprep.mubr.msk.f32.mxu0 %vm599_vm1, %v2851_v30  ;;  %2025 = vmatpush3.bf16.msra.mxu0 %v2331_v35  ;;  %v2353_v35 = vld [vmem:[%s3073_s3 + $0x78] sm:$0xff]  }
 0x185   : > { %1996 = vmatmul.mubr.msk.f32.gmra.mrb[6].mxu1 %vm599_vm1, %v2849_v29  ;;  %2026 = vmatprep.subr.bf16.mxu0 %v2333_v37 }
 0x186   : > { %2001 = vmatpush3.bf16.msra.mxu1 %v2327_v26  ;;  %2006 = vmatprep.mubr.msk.bf16.mxu1 %vm452_vm0, %v2822_v5  ;;  %v2348_v26 = vld [vmem:[%s3073_s3 + $0x50] sm:$0xff]  }
 0x187   : > { %2002 = vmatprep.subr.bf16.mxu1 %v2328_v31  ;;  %2022 = vmatmul.mubr.msk.f32.gmra.mrb[6].mxu0 %vm599_vm1, %v2859_v32 }
 0x188   : > { %2027 = vmatpush3.bf16.msra.mxu0 %v2333_v37 }
 0x189   : > { %2028 = vmatprep.subr.bf16.mxu0 %v2335_v39 }
 0x18a   : > { %2003 = vmatpush3.bf16.msra.mxu1 %v2328_v31  ;;  %v2349_v31 = vld [vmem:[%s3073_s3 + $0x58] sm:$0xff]  }
 0x18b   : > { %2004 = vmatprep.subr.bf16.mxu1 %v2329_v33 }
 0x18c   : > { %2029 = vmatpush3.bf16.msra.mxu0 %v2335_v39 }
 0x18d   : > { %2030 = vmatprep.subr.bf16.mxu0 %v2337_v41 }
 0x18e   : > { %2005 = vmatpush3.bf16.msra.mxu1 %v2329_v33  ;;  %v2350_v33 = vld [vmem:[%s3073_s3 + $0x60] sm:$0xff]  }
 0x18f   : > { %2044 = vmatprep.subr.bf16.mxu1 %v2330_v34 }
 0x190   : > { %2031 = vmatpush3.bf16.msra.mxu0 %v2337_v41 }
 0x191   : > { %2007 = vmatmul.mubr.msk.bf16.vlgmr.msra.gmra.mrb[8].mxu1 %vm452_vm0, %v2323_v9  ;;  %2032 = vmatprep.subr.bf16.mxu0 %v2339_v43 }
 0x192   : > { %2045 = vmatpush3.bf16.msra.mxu1 %v2330_v34  ;;  %v2351_v34 = vld [vmem:[%s3073_s3 + $0x68] sm:$0xff]  }
 0x193   : > { %2046 = vmatprep.subr.bf16.mxu1 %v2332_v36 }
 0x194   : > { %2033 = vmatpush3.bf16.msra.mxu0 %v2339_v43 }
 0x195   : > { %2034 = vmatprep.subr.bf16.mxu0 %v2341_v45 }
 0x196   : > { %2047 = vmatpush3.bf16.msra.mxu1 %v2332_v36 }
 0x197   : > { %2048 = vmatprep.subr.bf16.mxu1 %v2334_v38 }
 0x198   : > { %2035 = vmatpush3.bf16.msra.mxu0 %v2341_v45 }
 0x199   : > { %2036 = vmatprep.subr.bf16.mxu0 %v2343_v47 }
 0x19a   : > { %2049 = vmatpush3.bf16.msra.mxu1 %v2334_v38 }
 0x19b   : > { %2050 = vmatprep.subr.bf16.mxu1 %v2336_v40 }
 0x19c   : > { %2037 = vmatpush3.bf16.msra.mxu0 %v2343_v47 }
 0x19d   : > { %2038 = vmatprep.subr.bf16.mxu0 %v2345_v49 }
 0x19e   : > { %2051 = vmatpush3.bf16.msra.mxu1 %v2336_v40 }
 0x19f   : > { %2052 = vmatprep.subr.bf16.mxu1 %v2338_v42 }
 0x1a0   : > { %2039 = vmatpush3.bf16.msra.mxu0 %v2345_v49  ;;  %v1437_v49 = vld [vmem:[%s3078_s8 + $0x8] sm:$0xff] }
 0x1a2   : > { %2053 = vmatpush3.bf16.msra.mxu1 %v2338_v42 }
 0x1a3   : > { %2054 = vmatprep.subr.bf16.mxu1 %v2340_v44 }
 0x1a6   : > { %2055 = vmatpush3.bf16.msra.mxu1 %v2340_v44 }
 0x1a7   : > { %2056 = vmatprep.subr.bf16.mxu1 %v2342_v46 }
 0x1aa   : > { %2057 = vmatpush3.bf16.msra.mxu1 %v2342_v46 }
 0x1ab   : > { %2058 = vmatprep.subr.bf16.mxu1 %v2344_v48 }
 0x1ae   : > { %2059 = vmatpush3.bf16.msra.mxu1 %v2344_v48  ;;  %v1436_v48 = vld [vmem:[%s3078_s8] sm:$0xff] }
 0x1af   : > { %2078 = vmatprep.subr.bf16.mxu1 %v2346_v50 }
 0x254   : > { %v1994_v51 = vpop.f32.mrb[4].mxu1 }
 0x255   : > { %v678_v52 = vpop.f32.mrb[5].mxu1 }
 0x256   : > { %v2020_v53 = vpop.f32.mrb[4].mxu0 }
 0x257   : > { %v848_v55 = vpop.f32.mrb[5].mxu0 }
 0x258   : > { %v1997_v54 = vpop.f32.mrb[6].mxu1 }
 0x259   : > { %v688_v56 = vpop.f32.mrb[7].mxu1 }
 0x25a   : > { %v2023_v57 = vpop.f32.mrb[6].mxu0 }
 0x25b   : > { %v858_v58 = vpop.f32.mrb[7].mxu0 }
 0x264   : > { %v2008_v59 = vpop.f32.mrb[8].mxu1 }
 0x265   : > { %v764_v60 = vadd.f32 %v2008_v59, %v688_v56  ;;  %v755_v61 = vpop.f32.mrb[9].mxu1  ;;  %v1445_v59 = vld [vmem:[%s3078_s8 + $0x48] sm:$0xff] }
 0x266   : > { %v756_v62 = vadd.f32 %v755_v61, %v678_v52  ;;  %v2009_v0 = vpop.f32.mrb[10].mxu1  ;;  %v1439_v52 = vld [vmem:[%s3078_s8 + $0x18] sm:$0xff] }
 0x267   : > { %v767_v1 = vadd.f32 %v2009_v0, %v1997_v54  ;;  %v869_v2 = vadd.f32 %v858_v58, %v764_v60  ;;  %v758_v3 = vpop.f32.mrb[11].mxu1  ;;  %v1443_v54 = vld [vmem:[%s3078_s8 + $0x38] sm:$0xff]  ;;  %v1444_v58 = vld [vmem:[%s3078_s8 + $0x40] sm:$0xff]  ;;  %v1449_v0 = vld [vmem:[%s3078_s8 + $0x68] sm:$0xff] }
 0x268   : > { %v867_v4 = vadd.f32 %v848_v55, %v756_v62  ;;  %v759_v5 = vadd.f32 %v1994_v51, %v758_v3  ;;  %v1438_v51 = vld [vmem:[%s3078_s8 + $0x10] sm:$0xff]  ;;  %v2209_v60 = vpack.c.bf16 %v1445_v59, %v1444_v58  ;;  %v1447_v61 = vld [vmem:[%s3078_s8 + $0x58] sm:$0xff] }
 0x269   : > { %v870_v6 = vadd.f32 %v2023_v57, %v767_v1  ;;  %v880_v7 = vadd.f32 %v1779_v63, %v869_v2  ;;  %v1450_v2 = vld [vmem:[%s3078_s8 + $0x70] sm:$0xff]  ;;  %v1451_v3 = vld [vmem:[%s3078_s8 + $0x78] sm:$0xff] }
 0x26a   : > { %v878_v8 = vadd.f32 %v1779_v63, %v867_v4  ;;  %v868_v9 = vadd.f32 %v2020_v53, %v759_v5  ;;  %v1441_v53 = vld [vmem:[%s3078_s8 + $0x28] sm:$0xff]  ;;  %v2221_v4 = vpack.c.bf16 %v1451_v3, %v1450_v2 }
 0x26b   : > { %v881_v12 = vadd.f32 %v1779_v63, %v870_v6  ;;  %v888_v13 = vmul.f32 0.2, %v880_v7  ;;  %vm884_vm2 = vcmp.gt.f32.partialorder %v880_v7, 0.0 }
 0x26c   : > { %v886_v14 = vmul.f32 0.2, %v878_v8  ;;  %v879_v15 = vadd.f32 %v1779_v63, %v868_v9  ;;  %vm882_vm4 = vcmp.gt.f32.partialorder %v878_v8, 0.0  ;;  %v1448_v63 = vld [vmem:[%s3078_s8 + $0x60] sm:$0xff] }
 0x26d   : > { %vm885_vm3 = vcmp.gt.f32.partialorder %v881_v12, 0.0  ;;  %v889_v16 = vmul.f32 0.2, %v881_v12  ;;  %v892_v18 = vsel %vm884_vm2, %v880_v7, %v888_v13  ;;  %v2217_v1 = vpack.c.bf16 %v1449_v0, %v1448_v63 }
 0x26e   : > { %v887_v17 = vmul.f32 0.2, %v879_v15  ;;  %vm883_vm5 = vcmp.gt.f32.partialorder %v879_v15, 0.0  ;;  %v890_v21 = vsel %vm882_vm4, %v878_v8, %v886_v14 }
 0x26f   : > { %v893_v19 = vsel %vm885_vm3, %v881_v12, %v889_v16  ;;  %v1844_v16 = vld [vmem:[%s3074_s4] ss:$0 sm:$0xff] }
 0x270   : > { %v895_v20 = vpack.c.bf16 %v893_v19, %v892_v18  ;;  %v891_v22 = vsel %vm883_vm5, %v879_v15, %v887_v17 }
 0x271   : > { %v894_v23 = vpack.c.bf16 %v891_v22, %v890_v21 }
 0x273   : > { %2040 = vmatprep.mubr.bf16.mxu0 %v894_v23  ;;  %2060 = vmatprep.mubr.bf16.mxu1 %v894_v23 }
 0x274   : > { %2041 = vmatmul.mubr.bf16.vlgmr.msra.gmra.mrb[8].mxu0 %v895_v20  ;;  %2061 = vmatmul.mubr.bf16.vlgmr.msra.gmra.mrb[12].mxu1 %v895_v20 }
 0x275   : > { %2079 = vmatpush3.bf16.msra.mxu1 %v2346_v50  ;;  %2094 = vmatprep.mubr.bf16.mxu1 %v894_v23  ;;  %v2193_v50 = vpack.c.bf16 %v1437_v49, %v1436_v48  ;;  %v1435_v48 = vld [vmem:[%s3077_s7 + $0x8] sm:$0xff] }
 0x276   : > { %2080 = vmatprep.subr.bf16.mxu1 %v2347_v24  ;;  %2072 = vmatprep.mubr.msk.f32.mxu0 %vm599_vm1, %v2831_v10  ;;  %v2352_v10 = vld [vmem:[%s3073_s3 + $0x70] sm:$0xff]  }
 0x279   : > { %2081 = vmatpush3.bf16.msra.mxu1 %v2347_v24 }
 0x27a   : > { %2082 = vmatprep.subr.bf16.mxu1 %v2348_v26 }
 0x27d   : > { %2083 = vmatpush3.bf16.msra.mxu1 %v2348_v26 }
 0x27e   : > { %2084 = vmatprep.subr.bf16.mxu1 %v2349_v31 }
 0x281   : > { %2085 = vmatpush3.bf16.msra.mxu1 %v2349_v31 }
 0x282   : > { %2086 = vmatprep.subr.bf16.mxu1 %v2350_v33 }
 0x285   : > { %2087 = vmatpush3.bf16.msra.mxu1 %v2350_v33 }
 0x286   : > { %2088 = vmatprep.subr.bf16.mxu1 %v2351_v34 }
 0x289   : > { %2089 = vmatpush3.bf16.msra.mxu1 %v2351_v34 }
 0x28a   : > { %2090 = vmatprep.subr.bf16.mxu1 %v2352_v10 }
 0x28d   : > { %2091 = vmatpush3.bf16.msra.mxu1 %v2352_v10 }
 0x28e   : > { %2092 = vmatprep.subr.bf16.mxu1 %v2353_v35 }
 0x291   : > { %2093 = vmatpush3.bf16.msra.mxu1 %v2353_v35 }
 0x294   : > { %2095 = vmatmul.mubr.bf16.vlgmr.msra.gmra.mrb[16].mxu1 %v895_v20 }
 0x347   : > { %v2042_v36 = vpop.f32.mrb[8].mxu0  ;;  %v2062_v37 = vpop.f32.mrb[12].mxu1 }
 0x348   : > { %v994_v38 = vpop.f32.mrb[9].mxu0  ;;  %v1125_v39 = vpop.f32.mrb[13].mxu1 }
 0x349   : > { %v2043_v40 = vpop.f32.mrb[10].mxu0  ;;  %v2063_v41 = vpop.f32.mrb[14].mxu1 }
 0x34a   : > { %v2181_v42 = vpack.c.bf16 %v2043_v40, %v2042_v36  ;;  %v2189_v43 = vpack.c.bf16 %v2063_v41, %v2062_v37  ;;  %v997_v44 = vpop.f32.mrb[11].mxu0  ;;  %v1128_v45 = vpop.f32.mrb[15].mxu1  ;;  %v1434_v41 = vld [vmem:[%s3077_s7] sm:$0xff] }
 0x34b   : > { %v2177_v46 = vpack.c.bf16 %v997_v44, %v994_v38  ;;  %v2185_v47 = vpack.c.bf16 %v1128_v45, %v1125_v39  ;;  %2158 = vmatprep.mubr.msk.f32.mxu1 %vm599_vm1, %v1434_v41 }
 0x34d   : > { %2178 = vmatprep.subr.bf16.mxu0 %v2177_v46 }
 0x34e   : > { %2180 = vmatpush3.bf16.msra.mxu0 %v2177_v46 }
 0x34f   : > { %2182 = vmatprep.subr.bf16.mxu0 %v2181_v42 }
 0x352   : > { %2184 = vmatpush3.bf16.msra.mxu0 %v2181_v42 }
 0x353   : > { %2186 = vmatprep.subr.bf16.mxu0 %v2185_v47 }
 0x355   : > { %2073 = vmatmul.mubr.msk.f32.vlgmr.msra.gmra.mrb[12].mxu0 %vm599_vm1, %v2839_v25  ;;  %v2197_v25 = vpack.c.bf16 %v1439_v52, %v1438_v51 }
 0x356   : > { %2188 = vmatpush3.bf16.msra.mxu0 %v2185_v47  ;;  %2075 = vmatprep.mubr.msk.f32.mxu0 %vm599_vm1, %v2841_v27  ;;  %v1440_v27 = vld [vmem:[%s3078_s8 + $0x20] sm:$0xff] }
 0x357   : > { %2190 = vmatprep.subr.bf16.mxu0 %v2189_v43 }
 0x359   : > { %2076 = vmatmul.mubr.msk.f32.gmra.mrb[14].mxu0 %vm599_vm1, %v2849_v29  ;;  %v2201_v29 = vpack.c.bf16 %v1441_v53, %v1440_v27 }
 0x35a   : > { %2192 = vmatpush3.bf16.msra.mxu0 %v2189_v43  ;;  %2106 = vmatprep.mubr.msk.f32.mxu0 %vm599_vm1, %v2835_v11  ;;  %v1442_v11 = vld [vmem:[%s3078_s8 + $0x30] sm:$0xff] }
 0x35b   : > { %2194 = vmatprep.subr.bf16.mxu0 %v2193_v50 }
 0x35d   : > { %2107 = vmatmul.mubr.msk.f32.vlgmr.msra.gmra.mrb[16].mxu0 %vm599_vm1, %v2845_v28  ;;  %v2205_v28 = vpack.c.bf16 %v1443_v54, %v1442_v11 }
 0x35e   : > { %2109 = vmatprep.mubr.msk.f32.mxu0 %vm599_vm1, %v2851_v30  ;;  %2196 = vmatpush3.bf16.msra.mxu0 %v2193_v50 }
 0x35f   : > { %2198 = vmatprep.subr.bf16.mxu0 %v2197_v25 }
 0x361   : > { %2110 = vmatmul.mubr.msk.f32.gmra.mrb[18].mxu0 %vm599_vm1, %v2859_v32  ;;  %v1446_v32 = vld [vmem:[%s3078_s8 + $0x50] sm:$0xff] }
 0x362   : > { %2200 = vmatpush3.bf16.msra.mxu0 %v2197_v25  ;;  %v2213_v62 = vpack.c.bf16 %v1447_v61, %v1446_v32 }
 0x363   : > { %2202 = vmatprep.subr.bf16.mxu0 %v2201_v29 }
 0x366   : > { %2204 = vmatpush3.bf16.msra.mxu0 %v2201_v29 }
 0x367   : > { %v2096_v55 = vpop.f32.mrb[16].mxu1  ;;  %2206 = vmatprep.subr.bf16.mxu0 %v2205_v28 }
 0x368   : > { %v1307_v30 = vpop.f32.mrb[17].mxu1 }
 0x369   : > { %v2097_v56 = vpop.f32.mrb[18].mxu1 }
 0x36a   : > { %v1310_v57 = vpop.f32.mrb[19].mxu1  ;;  %2208 = vmatpush3.bf16.msra.mxu0 %v2205_v28 }
 0x36b   : > { %2210 = vmatprep.subr.bf16.mxu0 %v2209_v60 }
 0x36e   : > { %2212 = vmatpush3.bf16.msra.mxu0 %v2209_v60 }
 0x36f   : > { %2214 = vmatprep.subr.bf16.mxu0 %v2213_v62 }
 0x372   : > { %2216 = vmatpush3.bf16.msra.mxu0 %v2213_v62 }
 0x373   : > { %2218 = vmatprep.subr.bf16.mxu0 %v2217_v1 }
 0x376   : > { %2220 = vmatpush3.bf16.msra.mxu0 %v2217_v1 }
 0x377   : > { %2222 = vmatprep.subr.bf16.mxu0 %v2221_v4 }
 0x37a   : > { %2224 = vmatpush3.bf16.msra.mxu0 %v2221_v4 }
 0x428   : > { %v2074_v5 = vpop.f32.mrb[12].mxu0 }
 0x429   : > { %v1311_v6 = vadd.f32 %v2074_v5, %v1310_v57  ;;  %v1206_v7 = vpop.f32.mrb[13].mxu0 }
 0x42a   : > { %v1308_v8 = vadd.f32 %v1307_v30, %v1206_v7 }
 0x42c   : > { %v2077_v9 = vpop.f32.mrb[14].mxu0 }
 0x42d   : > { %v1319_v12 = vadd.f32 %v2097_v56, %v2077_v9  ;;  %v1216_v13 = vpop.f32.mrb[15].mxu0 }
 0x42e   : > { %v1316_v14 = vadd.f32 %v2096_v55, %v1216_v13 }
 0x430   : > { %v2108_v15 = vpop.f32.mrb[16].mxu0 }
 0x431   : > { %v1408_v17 = vadd.f32 %v2108_v15, %v1311_v6  ;;  %v1388_v18 = vpop.f32.mrb[17].mxu0 }
 0x432   : > { %v1407_v19 = vadd.f32 %v1388_v18, %v1308_v8 }
 0x433   : > { %v1419_v20 = vadd.f32 %v1844_v16, %v1408_v17 }
 0x434   : > { %v1418_v21 = vadd.f32 %v1844_v16, %v1407_v19  ;;  %v2111_v22 = vpop.f32.mrb[18].mxu0 }
 0x435   : > { %v1427_v23 = vmul.f32 0.2, %v1419_v20  ;;  %v1410_v24 = vadd.f32 %v2111_v22, %v1319_v12  ;;  %v1398_v26 = vpop.f32.mrb[19].mxu0  ;;  %vm1423_vm6 = vcmp.gt.f32.partialorder %v1419_v20, 0.0 }
 0x436   : > { %v1409_v31 = vadd.f32 %v1398_v26, %v1316_v14  ;;  %vm1422_vm7 = vcmp.gt.f32.partialorder %v1418_v21, 0.0  ;;  %v1426_v33 = vmul.f32 0.2, %v1418_v21 }
 0x437   : > { %v1421_v34 = vadd.f32 %v1844_v16, %v1410_v24  ;;  %v1431_v36 = vsel %vm1423_vm6, %v1419_v20, %v1427_v23 }
 0x438   : > { %v1420_v10 = vadd.f32 %v1844_v16, %v1409_v31  ;;  %v1430_v35 = vsel %vm1422_vm7, %v1418_v21, %v1426_v33 }
 0x439   : > { %2144 = vmatprep.mubr.f32.mxu0 %v1430_v35  ;;  %v1429_v37 = vmul.f32 0.2, %v1421_v34  ;;  %vm1425_vm9 = vcmp.gt.f32.partialorder %v1421_v34, 0.0 }
 0x43a   : > { %2145 = vmatmul.mubr.f32.vlgmr.msra.gmra.mrb[20].mxu0 %v1431_v36  ;;  %vm1424_vm8 = vcmp.gt.f32.partialorder %v1420_v10, 0.0  ;;  %v1428_v38 = vmul.f32 0.2, %v1420_v10 }
 0x43b   : > { %v1433_v40 = vsel %vm1425_vm9, %v1421_v34, %v1429_v37 }
 0x43c   : > { %v1432_v39 = vsel %vm1424_vm8, %v1420_v10, %v1428_v38 }
 0x43d   : > { %2147 = vmatprep.mubr.f32.mxu0 %v1432_v39 }
 0x43e   : > { %2148 = vmatmul.mubr.f32.gmra.mrb[22].mxu0 %v1433_v40 }
 0x50d   : > { %v2146_v42 = vpop.f32.mrb[20].mxu0 }
 0x50e   : > { %v1518_v43 = vpop.f32.mrb[21].mxu0 }
 0x50f   : > { %v2225_v44 = vpack.c.bf16 %v2146_v42, %v1518_v43 }
 0x511   : > { %v2149_v45 = vpop.f32.mrb[22].mxu0  ;;  %2226 = vmatprep.subr.bf16.mxu1 %v2225_v44 }
 0x512   : > { %v1528_v46 = vpop.f32.mrb[23].mxu0  ;;  %2228 = vmatpush3.bf16.msra.mxu1 %v2225_v44 }
 0x513   : > { %v2229_v47 = vpack.c.bf16 %v2149_v45, %v1528_v46 }
 0x515   : > { %2230 = vmatprep.subr.bf16.mxu1 %v2229_v47 }
 0x516   : > { %2232 = vmatpush3.bf16.msra.mxu1 %v2229_v47 }
 0x519   : > { %2159 = vmatmul.mubr.msk.f32.vlgmr.msra.gmra.mrb[20].mxu1 %vm599_vm1, %v1435_v48 }
 0x5ec   : > { %v2160_v49 = vpop.f32.mrb[20].mxu1 }
 0x5ed   : > { %1619 = vst.msk [vmem:[%s394_s22 + $0x8] sm:$0xff] %vm452_vm0, %v2160_v49  ;;  %v1609_v50 = vpop.f32.mrb[21].mxu1 }
 0x5ee   : > { %1618 = vst.msk [vmem:[%s394_s22] sm:$0xff] %vm452_vm0, %v1609_v50 }
 0x5ef   : > { %2481 = shalt.err (!%p2478_p4)
}
 0x5f0   : > { %s2482_s17 = scalar_lea.hbm %s3024_s23, 256  ;;  %s2486_s22 = scalar_lea.hbm %s3110_s21, 512 }
 0x5f1   : > { %p2483_p9 = scmp.ne.s32.totalorder %s3024_s23, %s2482_s17  ;;  %p2487_p8 = scmp.lt.u32.totalorder %s3024_s23, %s3110_s21 }
 0x5f2   : > { %p2488_p13 = scmp.lt.u32.totalorder %s2486_s22, %s2482_s17  ;;  %p2490_p10 = scmp.lt.u32.totalorder %s2482_s17, %s3024_s23 }
 0x5f3   : > { %p2484_p0 = pnand %p2483_p9, %p2750_p5 }
 0x5f4   : > { %p2489_p6 = por %p2488_p13, %p2487_p8 }
 0x5f5   : > { %p2485_p11 = pneg %p2484_p0 }
 0x5f6   : > { %p2491_p3 = por %p2490_p10, %p2489_p6 }
 0x5f8   : > { %p2492_p7 = pnand %p2491_p3, %p2485_p11 }
 0x5fa   : > { %2495 = shalt.err (!%p2492_p7)
}
 0x5fb   : > { %s2553_s18 = smov 128   ;;  %s2554_s30 = smov 8  }
 0x5fc   : > { %2247 = dma.vmem_to_hbm [thread:$0]  (%p2750_p5), %s3019_s26, 256, %s3024_s23, %s1621_s25, %s2553_s18, %s2553_s18, %s2554_s30  }
 0x5fd PF: > { %s3111_s9 = sld [smem:[#allocation15_spill]]  ;;  %s3112_s13 = sld [smem:[#allocation16_spill]] }
 0x5fe   : > { %p3114_p1 = scmp.ge.s32.totalorder %s2542_s12, 2 }
 0x603   : > { %s1649_s19 = sand.u32 1, %s3111_s9   ;;  %p3113_p12 = scmp.ne.s32.totalorder %s3112_s13, 0 }
 0x604   : > { %s1650_s15 = scalar_lea.sflag [#allocation4], %s1649_s19 }
 0x605   : > { %p2264_p2 = pnand %p3114_p1, %p3113_p12 }
 0x607   : > { %2525 = dma.done.wait (!%p2264_p2), %s1650_s15, 256  }
 0x608   : > { %2527 = vsyncadd (!%p2264_p2), %s1650_s15, 4294967040  ;;  %p24_p4 = scmp.ge.s32.totalorder %s2718_s29, 4   ;;  %s3115_s30 = smov %s2534_s10 }
 0x609   : > { %s3116_s10 = smov %s2538_s11  ;;  %s3117_s11 = smov %s2746_s20 }
 0x60a   : > { %s3118_s12 = smov %s2718_s29  ;;  %26 = sbr.rel (!%p24_p4) target bundleno = 10 (0xa), region = 117 }
 0x611   :  { %1655 = vsyncpa [#allocation3], 1 }
 0x612   :  { %1657 = vsyncpa [#allocation3 + $0x1], 1 }
 0x613   :  { %1658 = vsyncpa [#allocation6], 1 }
 0x614   :  { %1659 = vsyncpa [#allocation9], 1 }
 0x615   :  { %1660 = vsyncpa [#allocation4], 1 }
 0x616   :  { %1662 = vsyncpa [#allocation4 + $0x1], 1 }

</bundles_post_ra>
